<compile_context>
chip_gen: v6e
topology: v6e:2x2x1
jax: 0.10.0
libtpu: 0.0.40
codegen_flags: <defaults>
</compile_context>

<pallas_src>
import jax
import jax.numpy as jnp
from jax import lax
from jax.experimental import pallas as pl
from jax.experimental.pallas import tpu as pltpu

_LANE = 128


def _round_up(a: int, b: int) -> int:
    return ((a + b - 1) // b) * b


def _packed_lookup_kernel(sidx_ref, table_ref, out_ref):
    # sidx_ref  : (ttg, g)  int32 -- slot-shifted token indices; invalid -> gn sentinel
    # table_ref : (gn, gn)  f32   -- block-diagonal fused logits table kron(I_g, emb@W^T+b)
    # out_ref   : (ttg, gn)       -- lane-dense packed logits (g tokens per output row)
    ttg, g = sidx_ref.shape
    gn = out_ref.shape[1]

    col = lax.broadcasted_iota(jnp.int32, (ttg, gn), 1)   # hoisted out of the slot loop
    sidx = sidx_ref[...]

    # Multi-hot row selector: exactly one hot column per token-slot; slots occupy
    # disjoint column ranges so summing the per-slot one-hots is exact.  g is a
    # small static constant, so this unrolls into g compare+select+add passes.
    m = jnp.zeros((ttg, gn), jnp.float32)
    for j in range(g):
        m = m + (col == sidx[:, j:j + 1]).astype(jnp.float32)

    out_ref[...] = jnp.dot(m, table_ref[...],
                           preferred_element_type=jnp.float32).astype(out_ref.dtype)


def fixed_embedding_classifier(x, emb_table, fc_w, fc_b, *,
                               token_tile=None, out_dtype=jnp.float32,
                               force_pallas=False):
    """Forward pass of FixedEmbeddingClassifier: fc(emb(x)).

    x         : integer indices, any leading shape (e.g. (B, S))
    emb_table : (n_ops, emb_dim) float32   (nn.Embedding.weight, frozen)
    fc_w      : (n_ops, emb_dim) float32   (nn.Linear.weight, PyTorch layout)
    fc_b      : (n_ops,) float32           (nn.Linear.bias)
    returns   : out_dtype array of shape x.shape + (n_ops,)
    """
    n_ops, emb_dim = emb_table.shape
    lead_shape = x.shape
    idx_flat = x.reshape(-1).astype(jnp.int32)
    T = idx_flat.shape[0]

    # ---- Packing geometry (lane-dense output) -----------------------------------
    if n_ops % _LANE == 0:
        g, gn = 1, n_ops                          # already lane aligned
    elif _LANE % n_ops == 0:
        g, gn = _LANE // n_ops, _LANE             # pack g tokens per 128-lane row
    else:
        g, gn = 1, _round_up(n_ops, _LANE)        # rare: pad columns (old behaviour)

    small_problem = (T < 4096) and not force_pallas
    table_too_big = gn > 1024                     # fused table would exceed ~4 MiB VMEM

    if small_problem or table_too_big:
        # Plain XLA forward (gather -> GEMV): avoids the O(n_ops^2) fused table for
        # large vocabularies and skips kernel-launch overhead for tiny batches.
        e = jnp.take(emb_table, idx_flat, axis=0)                         # (T, emb_dim)
        out = lax.dot_general(e, fc_w, (((1,), (1,)), ((), ())),
                              preferred_element_type=jnp.float32) + fc_b[None, :]
        return out.astype(out_dtype).reshape(*lead_shape, n_ops)

    # ---- Fused logits table ------------------------------------------------------
    # table[i, o] = sum_e emb[i, e] * W[o, e] + b[o]   (no materialized fc_w.T copy)
    logits_table = lax.dot_general(
        emb_table, fc_w, (((1,), (1,)), ((), ())),
        preferred_element_type=jnp.float32) + fc_b[None, :]              # (n_ops, n_ops)

    if g > 1:
        # Block-diagonal "slotted" table: slot j owns rows/cols [j*n_ops, (j+1)*n_ops).
        table_k = jnp.kron(jnp.eye(g, dtype=jnp.float32), logits_table)  # (gn, gn)
    else:
        table_k = jnp.pad(logits_table,
                          ((0, gn - n_ops), (0, gn - n_ops)))            # (gn, gn)

    # ---- Token tiling ------------------------------------------------------------
    out_itemsize = jnp.dtype(out_dtype).itemsize
    unit = 16 * g                      # packed rows multiple of 16 (covers f32 & bf16 tiling)
    if token_tile is None:
        token_tile = 4096 * g          # ~2 MiB output block independent of packing factor
    max_tt = max(unit, ((8 * 2**20) // (gn * out_itemsize)) * g)   # cap out block at ~8 MiB
    tt = max(unit, (min(int(token_tile), max_tt) // unit) * unit)
    tt = min(tt, _round_up(T, unit))   # don't pad a tiny input up to a huge tile
    T_pad = _round_up(T, tt)
    ttg = tt // g
    R_pad = T_pad // g

    # ---- Slot-shifted indices ------------------------------------------------------
    # sidx[t] = (t % g) * n_ops + idx[t].  Invalid indices get the sentinel gn so they
    # never match any table row -> all-zero logits for that token (PyTorch would raise).
    idx_pad = jnp.pad(idx_flat, (0, T_pad - T))
    slot = (jnp.arange(T_pad, dtype=jnp.int32) % g) * n_ops
    valid = (idx_pad >= 0) & (idx_pad < n_ops)
    sidx = jnp.where(valid, idx_pad + slot, gn).astype(jnp.int32).reshape(R_pad, g)

    # ---- VMEM budget: real block footprints, clamped to this chip's capacity -------
    idx_blk = ttg * _LANE * 4                       # (ttg, g) i32 lane-pads to 128 in VMEM
    out_blk = ttg * gn * out_itemsize
    tbl_blk = gn * gn * 4
    est = 2 * (idx_blk + out_blk + tbl_blk) + (2 << 20)
    try:
        vmem_cap = int(getattr(pltpu.get_tpu_info(), "vmem_capacity_bytes", 64 * 2**20))
    except Exception:
        vmem_cap = 64 * 2**20                       # conservative (v7x) fallback
    vmem_limit = int(min(vmem_cap * 3 // 4, max(16 * 2**20, est)))

    out_packed = pl.pallas_call(
        _packed_lookup_kernel,
        out_shape=jax.ShapeDtypeStruct((R_pad, gn), out_dtype),
        grid_spec=pltpu.PrefetchScalarGridSpec(
            num_scalar_prefetch=0,
            grid=(R_pad // ttg,),
            in_specs=[
                pl.BlockSpec((ttg, g), lambda i: (i, 0)),   # shifted indices (HBM-contiguous)
                pl.BlockSpec((gn, gn), lambda i: (0, 0)),   # fused table, fetched once
            ],
            out_specs=pl.BlockSpec((ttg, gn), lambda i: (i, 0)),  # lane-dense packed out
        ),
        compiler_params=pltpu.CompilerParams(
            # Single token-tile axis; "parallel" lets multi-TC parts (v7x) shard tiles.
            # TODO(synk): confirm the 2-TensorCore split on v7x in xprof.
            dimension_semantics=("parallel",),
            vmem_limit_bytes=vmem_limit),
    )(sidx, table_k)

    if g > 1:
        out_flat = out_packed.reshape(T_pad, n_ops)   # free: row-major compatible view
    else:
        out_flat = out_packed[:, :n_ops]              # only for non-dividing n_ops
    return out_flat[:T].reshape(*lead_shape, n_ops)


if __name__ == "__main__":
    # Small deterministic setup consistent with the module:
    #   n_ops = 16, emb_dim = 16, batch = 8, seq = 8
    n_ops, emb_dim = 16, 16
    B, S = 8, 8

    key = jax.random.PRNGKey(0)
    k_emb, k_w, k_b, k_x = jax.random.split(key, 4)

    # nn.Embedding default init: N(0, 1) (frozen; forward semantics identical).
    emb_table = jax.random.normal(k_emb, (n_ops, emb_dim), dtype=jnp.float32)

    # nn.Linear default init: U(-1/sqrt(fan_in), 1/sqrt(fan_in)).
    bound = 1.0 / (emb_dim ** 0.5)
    fc_w = jax.random.uniform(k_w, (n_ops, emb_dim), jnp.float32, -bound, bound)
    fc_b = jax.random.uniform(k_b, (n_ops,), jnp.float32, -bound, bound)

    x = jax.random.randint(k_x, (B, S), 0, n_ops, dtype=jnp.int32)

    # force_pallas=True so the toy size exercises the kernel (the auto dispatcher
    # would otherwise pick the plain-XLA path at T = 64 tokens).
    out = fixed_embedding_classifier(x, emb_table, fc_w, fc_b, force_pallas=True)
    out = jax.block_until_ready(out)

    # Pure-JAX reference check.
    ref = emb_table[x] @ fc_w.T + fc_b
    assert out.shape == (B, S, n_ops)
    assert jnp.allclose(out, ref, atol=1e-4, rtol=1e-4), \
        float(jnp.max(jnp.abs(out - ref)))

    # Also sanity-check the auto-dispatch (plain-XLA) path agrees.
    out_xla = fixed_embedding_classifier(x, emb_table, fc_w, fc_b)
    assert jnp.allclose(out_xla, ref, atol=1e-4, rtol=1e-4)

    print("KERNEL_OK")
</pallas_src>

<mosaic_0001>
module attributes {stable_mosaic.version = 11 : i64} {
  func.func @_packed_lookup_kernel(%arg0: i32, %arg1: memref<16x8xi32, #tpu.memory_space<vmem>>, %arg2: memref<128x128xf32, #tpu.memory_space<vmem>>, %arg3: memref<16x128xf32, #tpu.memory_space<vmem>>) attributes {dimension_semantics = [#tpu.dimension_semantics<parallel>], iteration_bounds = array<i64: 1>, scalar_prefetch = 0 : i64, scratch_operands = 0 : i64, tpu.core_type = #tpu.core_type<tc>, window_params = [{transform_indices = @transform_0, window_bounds = array<i64: 16, 8>}, {pipeline_mode = #tpu.pipeline_mode<synchronous>, transform_indices = @transform_1, window_bounds = array<i64: 128, 128>}, {transform_indices = @transform_2, window_bounds = array<i64: 16, 128>}]} {
    %0 = tpu.iota {dimensions = array<i32: 1>} : vector<16x128xi32>
    %c0 = arith.constant 0 : index
    %c0_0 = arith.constant 0 : index
    %1 = vector.load %arg1[%c0, %c0_0] : memref<16x8xi32, #tpu.memory_space<vmem>>, vector<16x8xi32>
    %cst = arith.constant 0.000000e+00 : f32
    %2 = vector.broadcast %cst : f32 to vector<16x128xf32>
    %3 = vector.extract_strided_slice %1 {offsets = [0, 0], sizes = [16, 1], strides = [1, 1]} : vector<16x8xi32> to vector<16x1xi32>
    %4 = vector.broadcast %3 : vector<16x1xi32> to vector<16x128xi32>
    %5 = arith.cmpi eq, %0, %4 : vector<16x128xi32>
    %6 = arith.extui %5 : vector<16x128xi1> to vector<16x128xi32>
    %7 = arith.sitofp %6 : vector<16x128xi32> to vector<16x128xf32>
    %8 = arith.addf %2, %7 : vector<16x128xf32>
    %9 = vector.extract_strided_slice %1 {offsets = [0, 1], sizes = [16, 1], strides = [1, 1]} : vector<16x8xi32> to vector<16x1xi32>
    %10 = vector.broadcast %9 : vector<16x1xi32> to vector<16x128xi32>
    %11 = arith.cmpi eq, %0, %10 : vector<16x128xi32>
    %12 = arith.extui %11 : vector<16x128xi1> to vector<16x128xi32>
    %13 = arith.sitofp %12 : vector<16x128xi32> to vector<16x128xf32>
    %14 = arith.addf %8, %13 : vector<16x128xf32>
    %15 = vector.extract_strided_slice %1 {offsets = [0, 2], sizes = [16, 1], strides = [1, 1]} : vector<16x8xi32> to vector<16x1xi32>
    %16 = vector.broadcast %15 : vector<16x1xi32> to vector<16x128xi32>
    %17 = arith.cmpi eq, %0, %16 : vector<16x128xi32>
    %18 = arith.extui %17 : vector<16x128xi1> to vector<16x128xi32>
    %19 = arith.sitofp %18 : vector<16x128xi32> to vector<16x128xf32>
    %20 = arith.addf %14, %19 : vector<16x128xf32>
    %21 = vector.extract_strided_slice %1 {offsets = [0, 3], sizes = [16, 1], strides = [1, 1]} : vector<16x8xi32> to vector<16x1xi32>
    %22 = vector.broadcast %21 : vector<16x1xi32> to vector<16x128xi32>
    %23 = arith.cmpi eq, %0, %22 : vector<16x128xi32>
    %24 = arith.extui %23 : vector<16x128xi1> to vector<16x128xi32>
    %25 = arith.sitofp %24 : vector<16x128xi32> to vector<16x128xf32>
    %26 = arith.addf %20, %25 : vector<16x128xf32>
    %27 = vector.extract_strided_slice %1 {offsets = [0, 4], sizes = [16, 1], strides = [1, 1]} : vector<16x8xi32> to vector<16x1xi32>
    %28 = vector.broadcast %27 : vector<16x1xi32> to vector<16x128xi32>
    %29 = arith.cmpi eq, %0, %28 : vector<16x128xi32>
    %30 = arith.extui %29 : vector<16x128xi1> to vector<16x128xi32>
    %31 = arith.sitofp %30 : vector<16x128xi32> to vector<16x128xf32>
    %32 = arith.addf %26, %31 : vector<16x128xf32>
    %33 = vector.extract_strided_slice %1 {offsets = [0, 5], sizes = [16, 1], strides = [1, 1]} : vector<16x8xi32> to vector<16x1xi32>
    %34 = vector.broadcast %33 : vector<16x1xi32> to vector<16x128xi32>
    %35 = arith.cmpi eq, %0, %34 : vector<16x128xi32>
    %36 = arith.extui %35 : vector<16x128xi1> to vector<16x128xi32>
    %37 = arith.sitofp %36 : vector<16x128xi32> to vector<16x128xf32>
    %38 = arith.addf %32, %37 : vector<16x128xf32>
    %39 = vector.extract_strided_slice %1 {offsets = [0, 6], sizes = [16, 1], strides = [1, 1]} : vector<16x8xi32> to vector<16x1xi32>
    %40 = vector.broadcast %39 : vector<16x1xi32> to vector<16x128xi32>
    %41 = arith.cmpi eq, %0, %40 : vector<16x128xi32>
    %42 = arith.extui %41 : vector<16x128xi1> to vector<16x128xi32>
    %43 = arith.sitofp %42 : vector<16x128xi32> to vector<16x128xf32>
    %44 = arith.addf %38, %43 : vector<16x128xf32>
    %45 = vector.extract_strided_slice %1 {offsets = [0, 7], sizes = [16, 1], strides = [1, 1]} : vector<16x8xi32> to vector<16x1xi32>
    %46 = vector.broadcast %45 : vector<16x1xi32> to vector<16x128xi32>
    %47 = arith.cmpi eq, %0, %46 : vector<16x128xi32>
    %48 = arith.extui %47 : vector<16x128xi1> to vector<16x128xi32>
    %49 = arith.sitofp %48 : vector<16x128xi32> to vector<16x128xf32>
    %50 = arith.addf %44, %49 : vector<16x128xf32>
    %c0_1 = arith.constant 0 : index
    %c0_2 = arith.constant 0 : index
    %51 = vector.load %arg2[%c0_1, %c0_2] : memref<128x128xf32, #tpu.memory_space<vmem>>, vector<128x128xf32>
    %cst_3 = arith.constant dense<0.000000e+00> : vector<16x128xf32>
    %52 = tpu.matmul %50, %51, %cst_3 {dimension_numbers = #tpu.dot_dimension_numbers<[1], [0], [0], [1], [0, 0, 1, 1], [], []>} : vector<16x128xf32>, vector<128x128xf32>, vector<16x128xf32> -> vector<16x128xf32>
    %c0_4 = arith.constant 0 : index
    %c0_5 = arith.constant 0 : index
    %53 = vector.load %arg3[%c0_4, %c0_5] : memref<16x128xf32, #tpu.memory_space<vmem>>, vector<16x128xf32>
    tpu.vector_store %arg3[%c0_4, %c0_5], %52 {strides = array<i32>} : memref<16x128xf32, #tpu.memory_space<vmem>>, vector<16x128xf32>,
    return
  }
  func.func @transform_0(%arg0: i32) -> (i32, i32) {
    %c0_i32 = arith.constant 0 : i32
    %c0_i32_0 = arith.constant 0 : i32
    return %arg0, %c0_i32 : i32, i32
  }
  func.func @transform_1(%arg0: i32) -> (i32, i32) {
    %c0_i32 = arith.constant 0 : i32
    %c0_i32_0 = arith.constant 0 : i32
    %c0_i32_1 = arith.constant 0 : i32
    return %c0_i32, %c0_i32_0 : i32, i32
  }
  func.func @transform_2(%arg0: i32) -> (i32, i32) {
    %c0_i32 = arith.constant 0 : i32
    %c0_i32_0 = arith.constant 0 : i32
    return %arg0, %c0_i32 : i32, i32
  }
}

</mosaic_0001>

<bundles_post_ra>
// kernel: tpu_custom_call.1
= control target key start
LH: loop header
LB: loop body
LE: loop exit
PB: predicated region body
PF: predicated region fallthrough
CT: control target
= control target key end

     0   :  { %7 = vsyncpa [#allocation3], 0  ;;  %s448_s0 = inlined_call_operand.vmem [shape: s32[16,8], index: 0, kind: input, shape index: {}]   ;;  %s449_s1 = inlined_call_operand.hbm [shape: f32[128,128], index: 1, kind: input, shape index: {}]   ;;  %s450_s2 = inlined_call_operand.hbm [shape: f32[16,128], index: 2, kind: output, shape index: {}]  }
   0x1   :  { %8 = vsyncpa [#allocation4], 0  ;;  %s392_s9 = smov [#allocation2]  }
   0x2   :  { %s16_s10 = sshll.u32 %s392_s9, 4  ;;  %s17_s10 = int_to_ptr.vmem [resolvable:$true] %s16_s10 }
   0x3   :  { %s356_s11 = scalar_lea.vmem %s17_s10, 2048  ;;  %p361_p1 = scmp.lt.s32.totalorder %s17_s10, %s17_s10 }
   0x4   :  { %p357_p0 = scmp.ne.s32.totalorder %s17_s10, %s356_s11  ;;  %p362_p2 = scmp.lt.s32.totalorder %s356_s11, %s356_s11 }
   0x6   :  { %p363_p3 = por %p362_p2, %p361_p1 }
   0x8   :  { %p364_p4 = pnand %p363_p3, %p357_p0 }
   0xa   :  { %367 = shalt.err (!%p364_p4)
}
   0xb   :  { %s393_s12 = smov 128   ;;  %s394_s13 = smov 8  }
   0xc   :  { %22 = dma.hbm_to_vmem [thread:$0]  %s449_s1, 2048, %s17_s10, [#allocation3], %s393_s12, %s393_s12, %s394_s13  }
   0xd   :  { %388 = dma.done.wait [#allocation3], 2048  }
   0xe   :  { %389 = vsyncadd [#allocation3], 4294965248  ;;  %v395_v0 = vmov 0   ;;  %v429_v1 = vld [vmem:[%s448_s0 + $0x8] sm:$0xff]  ;;  %v28_v2 = vld [vmem:[%s448_s0] sm:$0xff]  ;;  %v396_v3 = vmov 1   ;;  %v26_v30 = vlaneseq }
   0xf   :  { %336 = vset.pattern.permute.xlu1 %v395_v0  ;;  %334 = vset.pattern.permute.xlu0 %v395_v0  ;;  %v397_v4 = vmov 2   ;;  %v157_v5 = vld [vmem:[#allocation2 + $0x78] sm:$0xff]  ;;  %v156_v6 = vld [vmem:[#allocation2 + $0x70] sm:$0xff]  ;;  %v398_v7 = vmov 3   ;;  %v399_v8 = vmov 4   ;;  %v155_v9 = vld [vmem:[#allocation2 + $0x68] sm:$0xff] }
  0x10   :  { %34 = vperm.xlu1 %336, %v429_v1   ;;  %31 = vperm.xlu0 %334, %v28_v2   ;;  %v154_v10 = vld [vmem:[#allocation2 + $0x60] sm:$0xff]  ;;  %v400_v11 = vmov 5   ;;  %v153_v12 = vld [vmem:[#allocation2 + $0x58] sm:$0xff]  ;;  %v152_v13 = vld [vmem:[#allocation2 + $0x50] sm:$0xff]  ;;  %v401_v14 = vmov 7   ;;  %v402_v20 = vmov 6  }
  0x11   :  { %286 = vmatprep.subr.mxu0 %v157_v5  ;;  %v151_v15 = vld [vmem:[#allocation2 + $0x48] sm:$0xff]  ;;  %v150_v16 = vld [vmem:[#allocation2 + $0x40] sm:$0xff]  ;;  %v149_v17 = vld [vmem:[#allocation2 + $0x38] sm:$0xff]  ;;  %v27_v32 = vand.u32 127, %v26_v30  ;;  %v403_v36 = vmov 0.0   ;;  %s404_s0 = smov [#allocation5]  }
  0x12   :  { %287 = vmatpush3.msra.mxu0 %v157_v5  ;;  %v148_v18 = vld [vmem:[#allocation2 + $0x30] sm:$0xff]  ;;  %v147_v19 = vld [vmem:[#allocation2 + $0x28] sm:$0xff]  ;;  %v146_v21 = vld [vmem:[#allocation2 + $0x20] sm:$0xff]  ;;  %s240_s1 = sshll.u32 %s404_s0, 4  ;;  %s241_s1 = int_to_ptr.vmem [resolvable:$true] %s240_s1 }
  0x13   :  { %288 = vmatprep.subr.mxu0 %v156_v6  ;;  %v145_v22 = vld [vmem:[#allocation2 + $0x18] sm:$0xff]  ;;  %v144_v23 = vld [vmem:[#allocation2 + $0x10] sm:$0xff]  ;;  %v143_v24 = vld [vmem:[#allocation2 + $0x8] sm:$0xff]  ;;  %s368_s20 = scalar_lea.vmem %s241_s1, 256  ;;  %p373_p6 = scmp.lt.s32.totalorder %s241_s1, %s241_s1 }
  0x14   :  { %337 = vset.pattern.permute.xlu1 %v396_v3  ;;  %335 = vset.pattern.permute.xlu0 %v396_v3  ;;  %v142_v25 = vld [vmem:[#allocation2] sm:$0xff]  ;;  %p369_p5 = scmp.ne.s32.totalorder %s241_s1, %s368_s20  ;;  %p374_p7 = scmp.lt.s32.totalorder %s368_s20, %s368_s20 }
  0x15   :  { %48 = vperm.xlu1 %337, %v429_v1   ;;  %45 = vperm.xlu0 %335, %v28_v2  }
  0x16   :  { %289 = vmatpush3.msra.mxu0 %v156_v6  ;;  %p375_p8 = por %p374_p7, %p373_p6 }
  0x17   :  { %290 = vmatprep.subr.mxu0 %v155_v9 }
  0x18   :  { %291 = vmatpush3.msra.mxu0 %v155_v9  ;;  %p376_p9 = pnand %p375_p8, %p369_p5 }
  0x19   :  { %338 = vset.pattern.permute.xlu1 %v397_v4  ;;  %339 = vset.pattern.permute.xlu0 %v397_v4 }
  0x1a   :  { %59 = vperm.xlu1 %338, %v28_v2   ;;  %62 = vperm.xlu0 %339, %v429_v1  }
  0x1b   :  { %292 = vmatprep.subr.mxu0 %v154_v10 }
  0x1c   :  { %293 = vmatpush3.msra.mxu0 %v154_v10 }
  0x1d   :  { %294 = vmatprep.subr.mxu0 %v153_v12 }
  0x1e   :  { %340 = vset.pattern.permute.xlu1 %v398_v7  ;;  %341 = vset.pattern.permute.xlu0 %v399_v8 }
  0x1f   :  { %73 = vperm.xlu1 %340, %v28_v2   ;;  %87 = vperm.xlu0 %341, %v28_v2  }
  0x20   :  { %295 = vmatpush3.msra.mxu0 %v153_v12 }
  0x21   :  { %296 = vmatprep.subr.mxu0 %v152_v13 }
  0x22   :  { %297 = vmatpush3.msra.mxu0 %v152_v13 }
  0x23   :  { %76 = vperm.xlu1 %340, %v429_v1   ;;  %344 = vset.pattern.permute.xlu0 %v400_v11 }
  0x24   :  { %104 = vperm.xlu0 %344, %v429_v1   ;;  %298 = vmatprep.subr.mxu0 %v151_v15 }
  0x25   :  { %299 = vmatpush3.msra.mxu0 %v151_v15 }
  0x26   :  { %300 = vmatprep.subr.mxu0 %v150_v16 }
  0x27   :  { %342 = vset.pattern.permute.xlu1 %v399_v8  ;;  %301 = vmatpush3.msra.mxu0 %v150_v16 }
  0x28   :  { %90 = vperm.xlu1 %342, %v429_v1   ;;  %346 = vset.pattern.permute.xlu0 %v401_v14 }
  0x29   :  { %129 = vperm.xlu0 %346, %v28_v2   ;;  %302 = vmatprep.subr.mxu0 %v149_v17 }
  0x2a   :  { %303 = vmatpush3.msra.mxu0 %v149_v17 }
  0x2b   :  { %304 = vmatprep.subr.mxu0 %v148_v18 }
  0x2c   :  { %343 = vset.pattern.permute.xlu1 %v400_v11  ;;  %305 = vmatpush3.msra.mxu0 %v148_v18 }
  0x2d   :  { %101 = vperm.xlu1 %343, %v28_v2   ;;  %306 = vmatprep.subr.mxu0 %v147_v19 }
  0x2e   :  { %307 = vmatpush3.msra.mxu0 %v147_v19 }
  0x2f   :  { %308 = vmatprep.subr.mxu0 %v146_v21 }
  0x30   :  { %309 = vmatpush3.msra.mxu0 %v146_v21 }
  0x31   :  { %345 = vset.pattern.permute.xlu1 %v402_v20  ;;  %310 = vmatprep.subr.mxu0 %v145_v22 }
  0x32   :  { %115 = vperm.xlu1 %345, %v28_v2   ;;  %311 = vmatpush3.msra.mxu0 %v145_v22 }
  0x33   :  { %312 = vmatprep.subr.mxu0 %v144_v23 }
  0x34   :  { %313 = vmatpush3.msra.mxu0 %v144_v23 }
  0x35   :  { %314 = vmatprep.subr.mxu0 %v143_v24 }
  0x36   :  { %118 = vperm.xlu1 %345, %v429_v1   ;;  %315 = vmatpush3.msra.mxu0 %v143_v24 }
  0x37   :  { %316 = vmatprep.subr.mxu0 %v142_v25 }
  0x38   :  { %317 = vmatpush3.msra.mxu0 %v142_v25 }
  0x3a   :  { %347 = vset.pattern.permute.xlu1 %v401_v14 }
  0x3b   :  { %132 = vperm.xlu1 %347, %v429_v1  }
  0x8b   :  { %v35_v26 = vpop.permute.xlu1 %34  ;;  %v32_v28 = vpop.permute.xlu0 %31 }
  0x8c   :  { %vm36_vm0 = vcmp.eq.s32.totalorder %v27_v32, %v32_v28  ;;  %vm37_vm6 = vcmp.eq.s32.totalorder %v27_v32, %v35_v26 }
  0x8d   :  { %v252_v37 = vsel %vm36_vm0, 1.0, %v403_v36  ;;  %v253_v51 = vsel %vm37_vm6, 1.0, %v403_v36 }
  0x90   :  { %v49_v27 = vpop.permute.xlu1 %48  ;;  %v46_v31 = vpop.permute.xlu0 %45 }
  0x91   :  { %vm50_vm1 = vcmp.eq.s32.totalorder %v27_v32, %v46_v31  ;;  %vm51_vm4 = vcmp.eq.s32.totalorder %v27_v32, %v49_v27 }
  0x92   :  { %v254_v38 = vsel %vm50_vm1, 1.0, %v403_v36  ;;  %v255_v46 = vsel %vm51_vm4, 1.0, %v403_v36 }
  0x93   :  { %v56_v40 = vadd.f32 %v254_v38, %v252_v37  ;;  %v57_v53 = vadd.f32 %v255_v46, %v253_v51 }
  0x95   :  { %v60_v29 = vpop.permute.xlu1 %59  ;;  %v63_v34 = vpop.permute.xlu0 %62 }
  0x96   :  { %vm64_vm2 = vcmp.eq.s32.totalorder %v27_v32, %v60_v29  ;;  %vm65_vm7 = vcmp.eq.s32.totalorder %v27_v32, %v63_v34 }
  0x97   :  { %v256_v41 = vsel %vm64_vm2, 1.0, %v403_v36  ;;  %v257_v52 = vsel %vm65_vm7, 1.0, %v403_v36 }
  0x98   :  { %v70_v45 = vadd.f32 %v256_v41, %v56_v40  ;;  %v71_v57 = vadd.f32 %v257_v52, %v57_v53 }
  0x9a   :  { %v74_v33 = vpop.permute.xlu1 %73  ;;  %v88_v39 = vpop.permute.xlu0 %87 }
  0x9b   :  { %vm78_vm3 = vcmp.eq.s32.totalorder %v27_v32, %v74_v33  ;;  %vm92_vm5 = vcmp.eq.s32.totalorder %v27_v32, %v88_v39 }
  0x9c   :  { %v258_v43 = vsel %vm78_vm3, 1.0, %v403_v36  ;;  %v260_v49 = vsel %vm92_vm5, 1.0, %v403_v36 }
  0x9d   :  { %v84_v47 = vadd.f32 %v258_v43, %v70_v45 }
  0x9e   :  { %v77_v35 = vpop.permute.xlu1 %76 }
  0x9f   :  { %v105_v44 = vpop.permute.xlu0 %104  ;;  %vm79_vm8 = vcmp.eq.s32.totalorder %v27_v32, %v77_v35  ;;  %v98_v55 = vadd.f32 %v260_v49, %v84_v47 }
  0xa0   :  { %v259_v56 = vsel %vm79_vm8, 1.0, %v403_v36  ;;  %vm107_vm13 = vcmp.eq.s32.totalorder %v27_v32, %v105_v44 }
  0xa1   :  { %v85_v61 = vadd.f32 %v259_v56, %v71_v57  ;;  %v263_v3 = vsel %vm107_vm13, 1.0, %v403_v36 }
  0xa3   :  { %v91_v42 = vpop.permute.xlu1 %90 }
  0xa4   :  { %v130_v50 = vpop.permute.xlu0 %129  ;;  %vm93_vm10 = vcmp.eq.s32.totalorder %v27_v32, %v91_v42 }
  0xa5   :  { %vm134_vm11 = vcmp.eq.s32.totalorder %v27_v32, %v130_v50  ;;  %v261_v59 = vsel %vm93_vm10, 1.0, %v403_v36 }
  0xa6   :  { %v266_v63 = vsel %vm134_vm11, 1.0, %v403_v36  ;;  %v99_v1 = vadd.f32 %v261_v59, %v85_v61 }
  0xa8   :  { %v102_v48 = vpop.permute.xlu1 %101  ;;  %v113_v6 = vadd.f32 %v263_v3, %v99_v1 }
  0xa9   :  { %vm106_vm9 = vcmp.eq.s32.totalorder %v27_v32, %v102_v48 }
  0xaa   :  { %v262_v54 = vsel %vm106_vm9, 1.0, %v403_v36 }
  0xab   :  { %v112_v60 = vadd.f32 %v262_v54, %v98_v55 }
  0xad   :  { %v116_v58 = vpop.permute.xlu1 %115 }
  0xae   :  { %vm120_vm12 = vcmp.eq.s32.totalorder %v27_v32, %v116_v58 }
  0xaf   :  { %v264_v62 = vsel %vm120_vm12, 1.0, %v403_v36 }
  0xb0   :  { %v126_v0 = vadd.f32 %v264_v62, %v112_v60 }
  0xb1   :  { %v119_v2 = vpop.permute.xlu1 %118 }
  0xb2   :  { %vm121_vm14 = vcmp.eq.s32.totalorder %v27_v32, %v119_v2  ;;  %v140_v4 = vadd.f32 %v266_v63, %v126_v0 }
  0xb3   :  { %v265_v5 = vsel %vm121_vm14, 1.0, %v403_v36 }
  0xb4   :  { %318 = vmatprep.mubr.f32.mxu0 %v140_v4  ;;  %v127_v8 = vadd.f32 %v265_v5, %v113_v6 }
  0xb6   :  { %v133_v7 = vpop.permute.xlu1 %132 }
  0xb7   :  { %vm135_vm15 = vcmp.eq.s32.totalorder %v27_v32, %v133_v7 }
  0xb8   :  { %v267_v9 = vsel %vm135_vm15, 1.0, %v403_v36 }
  0xb9   :  { %v141_v10 = vadd.f32 %v267_v9, %v127_v8 }
  0xbb   :  { %319 = vmatmul.mubr.f32.vlgmr.msra.gmra.mxu0 %v141_v10 }
 0x17b   :  { %v320_v11 = vpop.f32.mrf.mxu0 }
 0x17c   :  { %234 = vst [vmem:[#allocation5 + $0x8] sm:$0xff] %v320_v11 }
 0x17d   :  { %v224_v12 = vpop.f32.mrf.mxu0 }
 0x17e   :  { %233 = vst [vmem:[#allocation5] sm:$0xff] %v224_v12 }
 0x17f   :  { %379 = shalt.err (!%p376_p9)
}
 0x180   :  { %246 = dma.vmem_to_hbm [thread:$0]  %s241_s1, 256, %s450_s2, [#allocation4], %s393_s12, %s393_s12, %s394_s13  }
 0x181   :  { %390 = dma.done.wait [#allocation4], 256  }
 0x182   :  { %391 = vsyncadd [#allocation4], 4294967040 }
 0x183   :  { %250 = vsyncpa [#allocation3], 1 }
 0x184   :  { %251 = vsyncpa [#allocation4], 1 }

</bundles_post_ra>
